<compile_context>
chip_gen: v7x
topology: tpu7x:2x2x1
jax: 0.10.0
libtpu: 0.0.40
codegen_flags: <defaults>
</compile_context>

<pallas_src>
import functools

import jax
import jax.numpy as jnp
from jax import lax
from jax.experimental import pallas as pl
from jax.experimental.pallas import tpu as pltpu


def _round_up(x: int, m: int) -> int:
    return (x + m - 1) // m * m


def _mlp_kernel(x_ref, *refs, use_act: bool, use_ln: bool, eps: float,
                pack_out: bool, tm: int, n_rows: int):
    """Fused MLP: [(Linear -> ReLU -> LayerNorm)] * k -> Linear, one row tile."""
    o_ref = refs[-1]
    param_refs = refs[:-1]
    n_layers = len(param_refs) // 2

    h = x_ref[...]                                     # (tm, d_in) f32

    # Ragged tail: the last input block may extend past N and contain garbage.
    # All ops are per-row, so garbage can't leak into valid rows; we still zero
    # it so the discarded rows can't produce Inf/NaN.  Compiled only if needed.
    if n_rows % tm != 0:
        row = pl.program_id(0) * tm + lax.broadcasted_iota(jnp.int32, (tm, 1), 0)
        h = jnp.where(row < n_rows, h, 0.0)

    for li in range(n_layers):
        w = param_refs[2 * li][...]                    # (d_in, d_out) bf16
        v = param_refs[2 * li + 1][...]                # (3, d_out) f32: [b; gamma; beta]
        y = jnp.dot(h.astype(jnp.bfloat16), w,
                    preferred_element_type=jnp.float32) + v[0:1, :]
        if li != n_layers - 1:
            if use_act:                                # nn.ReLU
                y = jnp.maximum(y, 0.0)
            if use_ln:                                 # nn.LayerNorm(dim), eps=1e-5
                mean = jnp.mean(y, axis=-1, keepdims=True)
                var = jnp.mean(jnp.square(y - mean), axis=-1, keepdims=True)
                y = (y - mean) * lax.rsqrt(var + eps)
                y = y * v[1:2, :] + v[2:3, :]
            # TODO(synk): dropout (p>0, training mode) not implemented; config default p=0.0 is identity.
        h = y                                          # (tm, d_out) f32

    if pack_out:
        tm_, d_out = h.shape
        # Lane-dense store: merge 128/d_out consecutive rows into one 128-lane
        # row so the kernel emits full-width vst instead of masked partials.
        o_ref[...] = h.reshape(tm_ * d_out // 128, 128).astype(o_ref.dtype)
    else:
        o_ref[...] = h.astype(o_ref.dtype)


def mlp_forward(x, params, *, use_act=True, use_ln=True, eps=1e-5,
                dropout=0.0, out_dtype=jnp.float32):
    """x: (N, D_in) f32; params: list of (w (d_in,d_out), b, gamma, beta all (1,d_out))."""
    # TODO(synk): dropout with p>0 (training) has no implementation here.
    assert dropout == 0.0, "dropout > 0 not implemented in the Pallas kernel"

    n, d_in = x.shape
    d_out = params[-1][0].shape[1]

    # Row tile: big enough to amortize the ~0.35us/grid-step overhead, small
    # enough to keep ~8 "parallel" steps (>=2 for tiny N) so v7x's two
    # TensorCores both get work and the DMA pipeline stays busy.  Capped at
    # 1024 rows; a (1024, d) f32 tile x2 buffers is far under the scoped VMEM
    # default (32 MiB) on every generation (v7x physical VMEM is 64 MiB, not
    # 128 MiB -- if feature dims grow, re-derive tm per chip and/or raise
    # vmem_limit_bytes with that ceiling in mind).
    tm = max(8, min(1024, _round_up(pl.cdiv(n, 8), 8)))
    grid = (pl.cdiv(n, tm),)
    n_alloc = grid[0] * tm                  # output allocated block-aligned; sliced to n below

    # Lane-dense output packing: view the (n_alloc, d_out) slab as
    # (n_alloc*d_out/128, 128) when that yields a legal block.
    blk_rows = (tm * d_out) // 128
    pack_out = (d_out % 128 != 0
                and (tm * d_out) % 128 == 0
                and (blk_rows % 8 == 0 or grid[0] == 1))

    inputs = [x]                                                   # f32, cast in-kernel
    in_specs = [pl.BlockSpec((tm, d_in), lambda i: (i, 0))]        # row tile
    for (w, b, gamma, beta) in params:
        di, do = w.shape
        vec = jnp.concatenate([b, gamma, beta], axis=0).astype(jnp.float32)
        inputs += [w.astype(jnp.bfloat16), vec]
        in_specs += [
            pl.BlockSpec((di, do), lambda i: (0, 0)),              # full weight, resident
            pl.BlockSpec((3, do), lambda i: (0, 0)),               # [b; gamma; beta], resident
        ]

    if pack_out:
        out_shape = jax.ShapeDtypeStruct((n_alloc * d_out // 128, 128), out_dtype)
        out_spec = pl.BlockSpec((blk_rows, 128), lambda i: (i, 0))
    else:
        out_shape = jax.ShapeDtypeStruct((n_alloc, d_out), out_dtype)
        out_spec = pl.BlockSpec((tm, d_out), lambda i: (i, 0))

    kernel = functools.partial(_mlp_kernel, use_act=use_act, use_ln=use_ln,
                               eps=eps, pack_out=pack_out, tm=tm, n_rows=n)
    out = pl.pallas_call(
        kernel,
        out_shape=out_shape,
        grid_spec=pltpu.PrefetchScalarGridSpec(
            num_scalar_prefetch=0,
            grid=grid,
            in_specs=in_specs,
            out_specs=out_spec,
        ),
        compiler_params=pltpu.CompilerParams(
            dimension_semantics=("parallel",)),
    )(*inputs)

    if pack_out:
        out = out.reshape(n_alloc, d_out)
    return out[:n]


def init_mlp_params(key, input_dim, intermediate, output_dim):
    """Deterministic synthetic parameters (PyTorch Linear init, weights stored transposed)."""
    params = []
    dims = [input_dim] + list(intermediate) + [output_dim]
    for li in range(len(dims) - 1):
        d_in, d_out = dims[li], dims[li + 1]
        key, kw, kb = jax.random.split(key, 3)
        bound = 1.0 / jnp.sqrt(d_in)
        w = jax.random.uniform(kw, (d_in, d_out), jnp.float32, -bound, bound)
        b = jax.random.uniform(kb, (1, d_out), jnp.float32, -bound, bound)
        gamma = jnp.ones((1, d_out), jnp.float32)     # LayerNorm weight
        beta = jnp.zeros((1, d_out), jnp.float32)     # LayerNorm bias
        params.append((w, b, gamma, beta))
    return params


def mlp_reference(x, params, *, use_act=True, use_ln=True, bf16_matmul=False):
    h = x.astype(jnp.float32)
    n_layers = len(params)
    for li, (w, b, gamma, beta) in enumerate(params):
        if bf16_matmul:
            h_mm, w_mm = h.astype(jnp.bfloat16), w.astype(jnp.bfloat16)
        else:
            h_mm, w_mm = h, w
        h = jnp.dot(h_mm, w_mm, preferred_element_type=jnp.float32) + b
        if li != n_layers - 1:
            if use_act:
                h = jnp.maximum(h, 0.0)
            if use_ln:
                mean = jnp.mean(h, axis=-1, keepdims=True)
                var = jnp.mean(jnp.square(h - mean), axis=-1, keepdims=True)
                h = (h - mean) * lax.rsqrt(var + 1e-5)
                h = h * gamma + beta
    return h


if __name__ == "__main__":
    key = jax.random.PRNGKey(0)
    kx, kp, kx2 = jax.random.split(key, 3)

    batch, seq, input_dim = 2, 8, 32
    intermediate = [64, 32]
    output_dim = 16

    params = init_mlp_params(kp, input_dim, intermediate, output_dim)

    # --- Primary demo: (batch, seq, input_dim) -> flatten rows -> MLP ---
    x = jax.random.normal(kx, (batch, seq, input_dim), jnp.float32)
    x2d = x.reshape(batch * seq, input_dim)       # (N, D): rows on sublanes, features on lanes

    fwd = jax.jit(lambda xx: mlp_forward(xx, params))
    out = jax.block_until_ready(fwd(x2d))
    assert out.shape == (batch * seq, output_dim)

    ref_bf16 = mlp_reference(x2d, params, bf16_matmul=True)
    assert jnp.allclose(out, ref_bf16, atol=1e-2, rtol=1e-2), "mismatch vs bf16 reference"
    ref_f32 = mlp_reference(x2d, params, bf16_matmul=False)
    assert jnp.allclose(out, ref_f32, atol=5e-2, rtol=5e-2), "mismatch vs f32 reference"

    out_final = out.reshape(batch, seq, output_dim)
    jax.block_until_ready(out_final)

    # --- Coverage test: larger, ragged N exercises tail-mask + packed store ---
    n_big = 1000                                   # N % tm != 0 and pack_out path enabled
    xb = jax.random.normal(kx2, (n_big, input_dim), jnp.float32)
    out_big = jax.block_until_ready(jax.jit(lambda xx: mlp_forward(xx, params))(xb))
    assert out_big.shape == (n_big, output_dim)
    ref_big = mlp_reference(xb, params, bf16_matmul=True)
    assert jnp.allclose(out_big, ref_big, atol=1e-2, rtol=1e-2), "mismatch on ragged/packed path"

    print("KERNEL_OK")
</pallas_src>

<mosaic_0001>
module attributes {stable_mosaic.version = 11 : i64} {
  func.func @_mlp_kernel(%arg0: i32, %arg1: memref<8x32xf32, #tpu.memory_space<vmem>>, %arg2: memref<32x64xbf16, #tpu.memory_space<vmem>>, %arg3: memref<3x64xf32, #tpu.memory_space<vmem>>, %arg4: memref<64x32xbf16, #tpu.memory_space<vmem>>, %arg5: memref<3x32xf32, #tpu.memory_space<vmem>>, %arg6: memref<32x16xbf16, #tpu.memory_space<vmem>>, %arg7: memref<3x16xf32, #tpu.memory_space<vmem>>, %arg8: memref<8x16xf32, #tpu.memory_space<vmem>>) attributes {dimension_semantics = [#tpu.dimension_semantics<parallel>], iteration_bounds = array<i64: 2>, scalar_prefetch = 0 : i64, scratch_operands = 0 : i64, tpu.core_type = #tpu.core_type<tc>, window_params = [{transform_indices = @transform_0, window_bounds = array<i64: 8, 32>}, {pipeline_mode = #tpu.pipeline_mode<synchronous>, transform_indices = @transform_1, window_bounds = array<i64: 32, 64>}, {pipeline_mode = #tpu.pipeline_mode<synchronous>, transform_indices = @transform_2, window_bounds = array<i64: 3, 64>}, {pipeline_mode = #tpu.pipeline_mode<synchronous>, transform_indices = @transform_3, window_bounds = array<i64: 64, 32>}, {pipeline_mode = #tpu.pipeline_mode<synchronous>, transform_indices = @transform_4, window_bounds = array<i64: 3, 32>}, {pipeline_mode = #tpu.pipeline_mode<synchronous>, transform_indices = @transform_5, window_bounds = array<i64: 32, 16>}, {pipeline_mode = #tpu.pipeline_mode<synchronous>, transform_indices = @transform_6, window_bounds = array<i64: 3, 16>}, {transform_indices = @transform_7, window_bounds = array<i64: 8, 16>}]} {
    %c0 = arith.constant 0 : index
    %c0_0 = arith.constant 0 : index
    %0 = vector.load %arg1[%c0, %c0_0] : memref<8x32xf32, #tpu.memory_space<vmem>>, vector<8x32xf32>
    %c0_1 = arith.constant 0 : index
    %c0_2 = arith.constant 0 : index
    %1 = vector.load %arg2[%c0_1, %c0_2] : memref<32x64xbf16, #tpu.memory_space<vmem>>, vector<32x64xbf16>
    %c0_3 = arith.constant 0 : index
    %c0_4 = arith.constant 0 : index
    %2 = vector.load %arg3[%c0_3, %c0_4] : memref<3x64xf32, #tpu.memory_space<vmem>>, vector<3x64xf32>
    %3 = arith.truncf %0 : vector<8x32xf32> to vector<8x32xbf16>
    %cst = arith.constant dense<0.000000e+00> : vector<8x64xf32>
    %4 = tpu.matmul %3, %1, %cst {dimension_numbers = #tpu.dot_dimension_numbers<[1], [0], [0], [1], [0, 0, 1, 1], [], []>} : vector<8x32xbf16>, vector<32x64xbf16>, vector<8x64xf32> -> vector<8x64xf32>
    %5 = vector.extract_strided_slice %2 {offsets = [0, 0], sizes = [1, 64], strides = [1, 1]} : vector<3x64xf32> to vector<1x64xf32>
    %6 = vector.broadcast %5 : vector<1x64xf32> to vector<8x64xf32>
    %7 = arith.addf %4, %6 : vector<8x64xf32>
    %cst_5 = arith.constant 0.000000e+00 : f32
    %8 = vector.broadcast %cst_5 : f32 to vector<8x64xf32>
    %9 = arith.maximumf %7, %8 : vector<8x64xf32>
    %cst_6 = arith.constant dense<0.000000e+00> : vector<8xf32>
    %10 = vector.multi_reduction <add>, %9, %cst_6 [1] : vector<8x64xf32> to vector<8xf32>
    %11 = vector.shape_cast %10 : vector<8xf32> to vector<8x1xf32>
    %cst_7 = arith.constant 6.400000e+01 : f32
    %12 = vector.broadcast %cst_7 : f32 to vector<8x1xf32>
    %13 = arith.divf %11, %12 : vector<8x1xf32>
    %14 = vector.broadcast %13 : vector<8x1xf32> to vector<8x64xf32>
    %15 = arith.subf %9, %14 : vector<8x64xf32>
    %16 = arith.mulf %15, %15 : vector<8x64xf32>
    %cst_8 = arith.constant dense<0.000000e+00> : vector<8xf32>
    %17 = vector.multi_reduction <add>, %16, %cst_8 [1] : vector<8x64xf32> to vector<8xf32>
    %18 = vector.shape_cast %17 : vector<8xf32> to vector<8x1xf32>
    %cst_9 = arith.constant 6.400000e+01 : f32
    %19 = vector.broadcast %cst_9 : f32 to vector<8x1xf32>
    %20 = arith.divf %18, %19 : vector<8x1xf32>
    %21 = vector.broadcast %13 : vector<8x1xf32> to vector<8x64xf32>
    %22 = arith.subf %9, %21 : vector<8x64xf32>
    %cst_10 = arith.constant 9.99999974E-6 : f32
    %23 = vector.broadcast %cst_10 : f32 to vector<8x1xf32>
    %24 = arith.addf %20, %23 : vector<8x1xf32>
    %25 = math.rsqrt %24 : vector<8x1xf32>
    %26 = vector.broadcast %25 : vector<8x1xf32> to vector<8x64xf32>
    %27 = arith.mulf %22, %26 : vector<8x64xf32>
    %28 = vector.extract_strided_slice %2 {offsets = [1, 0], sizes = [1, 64], strides = [1, 1]} : vector<3x64xf32> to vector<1x64xf32>
    %29 = vector.broadcast %28 : vector<1x64xf32> to vector<8x64xf32>
    %30 = arith.mulf %27, %29 : vector<8x64xf32>
    %31 = vector.extract_strided_slice %2 {offsets = [2, 0], sizes = [1, 64], strides = [1, 1]} : vector<3x64xf32> to vector<1x64xf32>
    %32 = vector.broadcast %31 : vector<1x64xf32> to vector<8x64xf32>
    %33 = arith.addf %30, %32 : vector<8x64xf32>
    %c0_11 = arith.constant 0 : index
    %c0_12 = arith.constant 0 : index
    %34 = vector.load %arg4[%c0_11, %c0_12] : memref<64x32xbf16, #tpu.memory_space<vmem>>, vector<64x32xbf16>
    %c0_13 = arith.constant 0 : index
    %c0_14 = arith.constant 0 : index
    %35 = vector.load %arg5[%c0_13, %c0_14] : memref<3x32xf32, #tpu.memory_space<vmem>>, vector<3x32xf32>
    %36 = arith.truncf %33 : vector<8x64xf32> to vector<8x64xbf16>
    %cst_15 = arith.constant dense<0.000000e+00> : vector<8x32xf32>
    %37 = tpu.matmul %36, %34, %cst_15 {dimension_numbers = #tpu.dot_dimension_numbers<[1], [0], [0], [1], [0, 0, 1, 1], [], []>} : vector<8x64xbf16>, vector<64x32xbf16>, vector<8x32xf32> -> vector<8x32xf32>
    %38 = vector.extract_strided_slice %35 {offsets = [0, 0], sizes = [1, 32], strides = [1, 1]} : vector<3x32xf32> to vector<1x32xf32>
    %39 = vector.broadcast %38 : vector<1x32xf32> to vector<8x32xf32>
    %40 = arith.addf %37, %39 : vector<8x32xf32>
    %cst_16 = arith.constant 0.000000e+00 : f32
    %41 = vector.broadcast %cst_16 : f32 to vector<8x32xf32>
    %42 = arith.maximumf %40, %41 : vector<8x32xf32>
    %cst_17 = arith.constant dense<0.000000e+00> : vector<8xf32>
    %43 = vector.multi_reduction <add>, %42, %cst_17 [1] : vector<8x32xf32> to vector<8xf32>
    %44 = vector.shape_cast %43 : vector<8xf32> to vector<8x1xf32>
    %cst_18 = arith.constant 3.200000e+01 : f32
    %45 = vector.broadcast %cst_18 : f32 to vector<8x1xf32>
    %46 = arith.divf %44, %45 : vector<8x1xf32>
    %47 = vector.broadcast %46 : vector<8x1xf32> to vector<8x32xf32>
    %48 = arith.subf %42, %47 : vector<8x32xf32>
    %49 = arith.mulf %48, %48 : vector<8x32xf32>
    %cst_19 = arith.constant dense<0.000000e+00> : vector<8xf32>
    %50 = vector.multi_reduction <add>, %49, %cst_19 [1] : vector<8x32xf32> to vector<8xf32>
    %51 = vector.shape_cast %50 : vector<8xf32> to vector<8x1xf32>
    %cst_20 = arith.constant 3.200000e+01 : f32
    %52 = vector.broadcast %cst_20 : f32 to vector<8x1xf32>
    %53 = arith.divf %51, %52 : vector<8x1xf32>
    %54 = vector.broadcast %46 : vector<8x1xf32> to vector<8x32xf32>
    %55 = arith.subf %42, %54 : vector<8x32xf32>
    %cst_21 = arith.constant 9.99999974E-6 : f32
    %56 = vector.broadcast %cst_21 : f32 to vector<8x1xf32>
    %57 = arith.addf %53, %56 : vector<8x1xf32>
    %58 = math.rsqrt %57 : vector<8x1xf32>
    %59 = vector.broadcast %58 : vector<8x1xf32> to vector<8x32xf32>
    %60 = arith.mulf %55, %59 : vector<8x32xf32>
    %61 = vector.extract_strided_slice %35 {offsets = [1, 0], sizes = [1, 32], strides = [1, 1]} : vector<3x32xf32> to vector<1x32xf32>
    %62 = vector.broadcast %61 : vector<1x32xf32> to vector<8x32xf32>
    %63 = arith.mulf %60, %62 : vector<8x32xf32>
    %64 = vector.extract_strided_slice %35 {offsets = [2, 0], sizes = [1, 32], strides = [1, 1]} : vector<3x32xf32> to vector<1x32xf32>
    %65 = vector.broadcast %64 : vector<1x32xf32> to vector<8x32xf32>
    %66 = arith.addf %63, %65 : vector<8x32xf32>
    %c0_22 = arith.constant 0 : index
    %c0_23 = arith.constant 0 : index
    %67 = vector.load %arg6[%c0_22, %c0_23] : memref<32x16xbf16, #tpu.memory_space<vmem>>, vector<32x16xbf16>
    %c0_24 = arith.constant 0 : index
    %c0_25 = arith.constant 0 : index
    %68 = vector.load %arg7[%c0_24, %c0_25] : memref<3x16xf32, #tpu.memory_space<vmem>>, vector<3x16xf32>
    %69 = arith.truncf %66 : vector<8x32xf32> to vector<8x32xbf16>
    %cst_26 = arith.constant dense<0.000000e+00> : vector<8x16xf32>
    %70 = tpu.matmul %69, %67, %cst_26 {dimension_numbers = #tpu.dot_dimension_numbers<[1], [0], [0], [1], [0, 0, 1, 1], [], []>} : vector<8x32xbf16>, vector<32x16xbf16>, vector<8x16xf32> -> vector<8x16xf32>
    %71 = vector.extract_strided_slice %68 {offsets = [0, 0], sizes = [1, 16], strides = [1, 1]} : vector<3x16xf32> to vector<1x16xf32>
    %72 = vector.broadcast %71 : vector<1x16xf32> to vector<8x16xf32>
    %73 = arith.addf %70, %72 : vector<8x16xf32>
    %c0_27 = arith.constant 0 : index
    %c0_28 = arith.constant 0 : index
    %74 = vector.load %arg8[%c0_27, %c0_28] : memref<8x16xf32, #tpu.memory_space<vmem>>, vector<8x16xf32>
    tpu.vector_store %arg8[%c0_27, %c0_28], %73 {strides = array<i32>} : memref<8x16xf32, #tpu.memory_space<vmem>>, vector<8x16xf32>,
    return
  }
  func.func @transform_0(%arg0: i32) -> (i32, i32) {
    %c0_i32 = arith.constant 0 : i32
    %c0_i32_0 = arith.constant 0 : i32
    return %arg0, %c0_i32 : i32, i32
  }
  func.func @transform_1(%arg0: i32) -> (i32, i32) {
    %c0_i32 = arith.constant 0 : i32
    %c0_i32_0 = arith.constant 0 : i32
    %c0_i32_1 = arith.constant 0 : i32
    return %c0_i32, %c0_i32_0 : i32, i32
  }
  func.func @transform_2(%arg0: i32) -> (i32, i32) {
    %c0_i32 = arith.constant 0 : i32
    %c0_i32_0 = arith.constant 0 : i32
    %c0_i32_1 = arith.constant 0 : i32
    return %c0_i32, %c0_i32_0 : i32, i32
  }
  func.func @transform_3(%arg0: i32) -> (i32, i32) {
    %c0_i32 = arith.constant 0 : i32
    %c0_i32_0 = arith.constant 0 : i32
    %c0_i32_1 = arith.constant 0 : i32
    return %c0_i32, %c0_i32_0 : i32, i32
  }
  func.func @transform_4(%arg0: i32) -> (i32, i32) {
    %c0_i32 = arith.constant 0 : i32
    %c0_i32_0 = arith.constant 0 : i32
    %c0_i32_1 = arith.constant 0 : i32
    return %c0_i32, %c0_i32_0 : i32, i32
  }
  func.func @transform_5(%arg0: i32) -> (i32, i32) {
    %c0_i32 = arith.constant 0 : i32
    %c0_i32_0 = arith.constant 0 : i32
    %c0_i32_1 = arith.constant 0 : i32
    return %c0_i32, %c0_i32_0 : i32, i32
  }
  func.func @transform_6(%arg0: i32) -> (i32, i32) {
    %c0_i32 = arith.constant 0 : i32
    %c0_i32_0 = arith.constant 0 : i32
    %c0_i32_1 = arith.constant 0 : i32
    return %c0_i32, %c0_i32_0 : i32, i32
  }
  func.func @transform_7(%arg0: i32) -> (i32, i32) {
    %c0_i32 = arith.constant 0 : i32
    %c0_i32_0 = arith.constant 0 : i32
    return %arg0, %c0_i32 : i32, i32
  }
}

</mosaic_0001>

<bundles_post_ra>
// kernel: _lambda_.1
= control target key start
LH: loop header
LB: loop body
LE: loop exit
PB: predicated region body
PF: predicated region fallthrough
CT: control target
= control target key end

     0   :  { %12 = vsyncpa [#allocation3], 0  ;;  %s1324_s0 = inlined_call_operand.hbm [shape: f32[16,32], index: 0, kind: input, shape index: {}]   ;;  %s1325_s1 = inlined_call_operand.hbm [shape: bf16[32,64], index: 1, kind: input, shape index: {}]   ;;  %s1326_s2 = inlined_call_operand.vmem [shape: f32[3,64], index: 2, kind: input, shape index: {}]   ;;  %s1327_s3 = inlined_call_operand.hbm [shape: bf16[64,32], index: 3, kind: input, shape index: {}]   ;;  %s1328_s4 = inlined_call_operand.vmem [shape: f32[3,32], index: 4, kind: input, shape index: {}]   ;;  %s1329_s5 = inlined_call_operand.vmem [shape: bf16[32,16], index: 5, kind: input, shape index: {}]   ;;  %s1330_s6 = inlined_call_operand.vmem [shape: f32[3,16], index: 6, kind: input, shape index: {}]   ;;  %s1331_s7 = inlined_call_operand.hbm [shape: f32[16,16], index: 7, kind: output, shape index: {}]  }
   0x1   :  { %14 = vsyncpa [#allocation3 + $0x1], 0 }
   0x2   :  { %15 = vsyncpa [#allocation6], 0 }
   0x3   :  { %16 = vsyncpa [#allocation4], 0 }
   0x4   :  { %18 = vsyncpa [#allocation4 + $0x1], 0  ;;  %s1048_s24 = smov 0   ;;  %s1050_s25 = smov 0  }
   0x5   :  { %s1052_s26 = smov 0   ;;  %s1054_s27 = smov 0  }
   0x6 LB: > { %s1069_s28 = sadd.s32 4294967295, %s998_s27   ;;  %s693_s29 = sadd.s32 4294967294, %s998_s27   ;;  %s998_s27 = sphi %s1054_s27, %s1351_s27   ;;  %s994_s26 = sphi %s1052_s26, %s1350_s26   ;;  %s990_s25 = sphi %s1050_s25, %s1349_s25   ;;  %s986_s24 = sphi %s1048_s24, %s1348_s24  }
   0x7   : > { %p44_p0 = scmp.ne.s32.totalorder %s990_s25, %s986_s24  ;;  %p1332_p1 = scmp.eq.s32.totalorder %s1069_s28, 0 }
   0x8   : > { %p200_p3 = scmp.eq.s32.totalorder %s693_s29, 1  ;;  %p694_p5 = scmp.ge.s32.totalorder %s998_s27, 1 }
   0x9   : > { %p1078_p4 = por %p1332_p1, %p44_p0  ;;  %p207_p7 = scmp.lt.s32.totalorder %s998_s27, 3 }
   0xa   : > { %p1083_p6 = por %p200_p3, %p44_p0  ;;  %s1000_s10 = smov [#allocation5]  }
   0xb   : > { %s1335_s30 = scalar_select %p1078_p4, 1, 0 }
   0xc   : > { %s1336_s8 = scalar_select %p1083_p6, 1, 0 }
   0xd   : > { %p1088_p8 = pnand %p694_p5, %p207_p7  ;;  %s219_s11 = sshll.u32 %s1000_s10, 4  ;;  %s1092_s11 = int_to_ptr.vmem [resolvable:$true] %s219_s11 }
   0xe   : > { %s1001_s13 = smov [#allocation7]   ;;  %s842_s17 = scalar_lea.hbm %s1325_s1, 256 }
   0xf   : > { %p771_p9 = pneg %p1088_p8  ;;  %s235_s14 = sshll.u32 %s1001_s13, 4  ;;  %s1103_s14 = int_to_ptr.vmem [resolvable:$true] %s235_s14 }
  0x10   : > { %p843_p12 = scmp.ne.s32.totalorder %s1325_s1, %s842_s17  ;;  %p849_p5 = scmp.lt.u32.totalorder %s842_s17, %s1325_s1 }
  0x11   : > { %p1099_p11 = pnand %p771_p9, %p1332_p1 }
  0x13   : > { %p844_p13 = pneg %p1099_p11 }
  0x15   : > { %p845_p0 = pnand %p844_p13, %p843_p12 }
  0x17   : > { %p846_p3 = pneg %p845_p0 }
  0x19   : > { %p851_p7 = pnand %p849_p5, %p846_p3 }
  0x1b   : > { %854 = shalt.err (!%p851_p7)
}
  0x1c   : > { %s855_s22 = scalar_lea.vmem %s1092_s11, 256  ;;  %p863_p2 = scmp.lt.s32.totalorder %s1092_s11, %s1092_s11 }
  0x1d   : > { %p856_p9 = scmp.ne.s32.totalorder %s1092_s11, %s855_s22  ;;  %p864_p12 = scmp.lt.s32.totalorder %s855_s22, %s855_s22 }
  0x1f   : > { %p858_p10 = pnand %p856_p9, %p844_p13  ;;  %p865_p0 = por %p864_p12, %p863_p2 }
  0x21   : > { %p859_p1 = pneg %p858_p10 }
  0x23   : > { %p866_p6 = pnand %p865_p0, %p859_p1 }
  0x25   : > { %869 = shalt.err (!%p866_p6)
}
  0x26   : > { %s1002_s23 = smov 64   ;;  %s1003_s29 = smov 4  }
  0x27   : > { %774 = dma.hbm_to_vmem [thread:$0]  (!%p1099_p11), %s1325_s1, 256, %s1092_s11, [#allocation6], %s1002_s23, %s1002_s23, %s1003_s29  }
  0x28   : > { %s870_s17 = scalar_lea.hbm %s1327_s3, 512 }
  0x29   : > { %p871_p2 = scmp.ne.s32.totalorder %s1327_s3, %s870_s17  ;;  %p877_p10 = scmp.lt.u32.totalorder %s870_s17, %s1327_s3 }
  0x2b   : > { %p873_p1 = pnand %p871_p2, %p844_p13 }
  0x2d   : > { %p874_p6 = pneg %p873_p1 }
  0x2f   : > { %p879_p3 = pnand %p877_p10, %p874_p6 }
  0x31   : > { %882 = shalt.err (!%p879_p3)
}
  0x32   : > { %s883_s11 = scalar_lea.vmem %s1103_s14, 512  ;;  %p891_p12 = scmp.lt.s32.totalorder %s1103_s14, %s1103_s14 }
  0x33   : > { %p884_p5 = scmp.ne.s32.totalorder %s1103_s14, %s883_s11  ;;  %p892_p0 = scmp.lt.s32.totalorder %s883_s11, %s883_s11 }
  0x35   : > { %p886_p7 = pnand %p884_p5, %p844_p13  ;;  %p893_p2 = por %p892_p0, %p891_p12 }
  0x37   : > { %p887_p9 = pneg %p886_p7 }
  0x39   : > { %p894_p1 = pnand %p893_p2, %p887_p9 }
  0x3b   : > { %897 = shalt.err (!%p894_p1)
}
  0x3c   : > { %777 = dma.hbm_to_vmem [thread:$0]  (!%p1099_p11), %s1327_s3, 512, %s1103_s14, [#allocation6], %s1002_s23, %s1002_s23, %s1003_s29  }
  0x3d   : > { %s1158_s13 = sadd.s32 1, %s998_s27   ;;  %s31_s12 = sadd.s32 1, %s994_s26 }
  0x3e   : > { %s28_s15 = ssub.s32 %s998_s27, %s1158_s13  ;;  %p38_p13 = scmp.ne.s32.totalorder %s994_s26, %s990_s25 }
  0x3f   : > { %p29_p6 = scmp.eq.s32.totalorder %s28_s15, 0  ;;  %p39_p10 = scmp.eq.s32.totalorder %s998_s27, 0 }
  0x40   : > { %p1339_p3 = scmp.eq.s32.totalorder %s1069_s28, 1  ;;  %p788_p7 = scmp.lt.s32.totalorder %s998_s27, 2 }
  0x41   : > { %s1174_s17 = scalar_select %p29_p6, %s994_s26, %s31_s12  }
  0x42   : > { %p1168_p5 = por %p1339_p3, %p38_p13  ;;  %p40_p9 = por %p39_p10, %p38_p13 }
  0x43   : > { %s258_s18 = sand.u32 1, %s994_s26   ;;  %s699_s14 = sshll.u32 %s998_s27, 7 }
  0x44   : > { %s1340_s16 = scalar_select %p1168_p5, 1, 0 }
  0x45   : > { %s698_s19 = sshll.u32 %s258_s18, 3  ;;  %s1181_s20 = scalar_lea.hbm %s1324_s0, %s699_s14 }
  0x46   : > { %s262_s21 = scalar_lea.vmem [#allocation2], %s698_s19  ;;  %p1185_p11 = pnand %p788_p7, %p40_p9 }
  0x47   : > { %s269_s11 = sshll.u32 %s262_s21, 4  ;;  %s259_s10 = scalar_lea.sflag [#allocation3], %s258_s18  ;;  %s1183_s11 = int_to_ptr.vmem [resolvable:$true] %s269_s11 }
  0x48   : > { %s898_s12 = scalar_lea.hbm %s1181_s20, 128  ;;  %p900_p0 = pneg %p1185_p11 }
  0x49   : > { %p899_p12 = scmp.ne.s32.totalorder %s1181_s20, %s898_s12  ;;  %s903_s14 = scalar_lea.hbm %s1324_s0, 256 }
  0x4a   : > { %p904_p13 = scmp.lt.u32.totalorder %s1181_s20, %s1324_s0  ;;  %p905_p6 = scmp.lt.u32.totalorder %s903_s14, %s898_s12 }
  0x4b   : > { %p901_p2 = pnand %p900_p0, %p899_p12  ;;  %p907_p3 = scmp.lt.u32.totalorder %s898_s12, %s1181_s20 }
  0x4c   : > { %p906_p10 = por %p905_p6, %p904_p13 }
  0x4d   : > { %p902_p1 = pneg %p901_p2 }
  0x4e   : > { %p908_p7 = por %p907_p3, %p906_p10 }
  0x50   : > { %p909_p9 = pnand %p908_p7, %p902_p1 }
  0x52   : > { %912 = shalt.err (!%p909_p9)
}
  0x53   : > { %s913_s18 = scalar_lea.vmem %s1183_s11, 128  ;;  %s1004_s21 = smov [#allocation2]  }
  0x54   : > { %p914_p12 = scmp.ne.s32.totalorder %s1183_s11, %s913_s18  ;;  %s918_s15 = sshll.u32 %s1004_s21, 4  ;;  %s919_s15 = int_to_ptr.vmem [resolvable:$false] %s918_s15 }
  0x55   : > { %s920_s19 = scalar_lea.vmem %s919_s15, 256  ;;  %p921_p4 = scmp.lt.s32.totalorder %s1183_s11, %s919_s15 }
  0x56   : > { %p916_p2 = pnand %p914_p12, %p900_p0  ;;  %p922_p13 = scmp.lt.s32.totalorder %s920_s19, %s913_s18 }
  0x58   : > { %p917_p5 = pneg %p916_p2  ;;  %p923_p6 = por %p922_p13, %p921_p4 }
  0x5a   : > { %p924_p10 = pnand %p923_p6, %p917_p5 }
  0x5c   : > { %927 = shalt.err (!%p924_p10)
}
  0x5d   : > { %781 = dma.hbm_to_vmem [thread:$0]  (!%p1185_p11), %s1181_s20, 128, %s1183_s11, %s259_s10  }
  0x5e   : > { %278 = sbr.rel (%p1088_p8) target bundleno = 1405 (0x57d), region = 48  ;;  %s1217_s12 = sand.u32 (!%p1088_p8), 1, %s990_s25  }
  0x5f   : > { %s701_s14 = sshll.u32 (!%p1088_p8), %s1217_s12, 3  ;;  %s281_s23 = scalar_lea.sflag (!%p1088_p8), [#allocation3], %s1217_s12 }
  0x60   : > { %s284_s29 = scalar_lea.vmem (!%p1088_p8), [#allocation2], %s701_s14  ;;  %p1342_p4 = scmp.ne.s32.totalorder (!%p1088_p8), %s1335_s30, 0 }
  0x65   : > { %973 = dma.done.wait (%p1342_p4), %s281_s23, 128  }
  0x66   : > { %975 = vsyncadd (%p1342_p4), %s281_s23, 4294967168  ;;  %p1343_p5 = scmp.eq.s32.totalorder %s1069_s28, 0 }
  0x68   : > { %977 = dma.done.wait (%p1343_p5), [#allocation6], 768   ;;  %p1344_p8 = pmov %p1343_p5 }
  0x69   : > { %v1005_v0 = vmov 0.0   ;;  %vm1006_vm0 = vmmov 0   ;;  %v830_v1 = vld [vmem:[#allocation5] sm:$0xff]   ;;  %v831_v2 = vld [vmem:[#allocation5 + $0x8] sm:$0xff]   ;;  %v324_v3 = vld [vmem:[%s284_s29] sm:$0xff]  ;;  %vm347_vm1 = vcmask 261120   ;;  %v331_v5 = vlaneseq }
  0x6a   : > { %979 = vsyncadd (%p1344_p8), [#allocation6], 4294966528  ;;  %731 = vmatprep.subr.bf16.mxu0 %v1005_v0  ;;  %735 = vmatprep.mubr.msk.bf16.mxu0 %vm1006_vm0, %v1005_v0  ;;  %v330_v4 = vpack.c.bf16 %v324_v3, %v324_v3  ;;  %v329_v8 = vld [vmem:[%s1326_s2] sm:$0x7]  ;;  %vm392_vm2 = vcmask 523264   ;;  %v833_v23 = vld [vmem:[#allocation7 + $0x8] sm:$0xff]  }
  0x6b   : > { %739 = vmatprep.subr.bf16.mxu1 %v1005_v0  ;;  %747 = vmatprep.mubr.msk.bf16.mxu1 %vm1006_vm0, %v1005_v0  ;;  %v1239_v6 = vshrl.u32 %v331_v5, 7  ;;  %v832_v22 = vld [vmem:[#allocation7] sm:$0xff]   ;;  %v834_v24 = vld [vmem:[#allocation7 + $0x10] sm:$0xff]   ;;  %v835_v25 = vld [vmem:[#allocation7 + $0x18] sm:$0xff]   ;;  %s717_s23 = sshll.u32 %s1069_s28, 7  ;;  %s322_s29 = scalar_lea.vmem [#allocation8], %s701_s14 }
  0x6c   : > { %732 = vmatpush3.bf16.msra.mxu0 %v830_v1  ;;  %740 = vmatpush3.bf16.msra.mxu1 %v832_v22  ;;  %v425_v38 = vld [vmem:[%s1328_s4] sm:$0x7]  ;;  %v837_v53 = vld [vmem:[%s1329_s5 + $0x8] sm:$0xff]   ;;  %s604_s30 = sshll.u32 %s322_s29, 4  ;;  %vm588_vm3 = vcmask 130048   ;;  %s1280_s11 = scalar_lea.hbm %s1331_s7, %s717_s23  ;;  %s1282_s30 = int_to_ptr.vmem [resolvable:$true] %s604_s30 }
  0x6d   : > { %733 = vmatprep.subr.bf16.mxu0 %v1005_v0  ;;  %v1242_v7 = vsub.s32 0, %v1239_v6  ;;  %741 = vmatprep.subr.bf16.mxu1 %v1005_v0  ;;  %v409_v29 = vsub.s32 1, %v1239_v6  ;;  %v414_v30 = vsub.s32 2, %v1239_v6  ;;  %v836_v52 = vld [vmem:[%s1329_s5] sm:$0xff]   ;;  %s591_s28 = scalar_lea.sflag [#allocation4], %s1217_s12  ;;  %s928_s14 = scalar_lea.vmem %s1282_s30, 128 }
  0x6e   : > { %p929_p11 = scmp.ne.s32.totalorder %s1282_s30, %s928_s14  ;;  %p1345_p0 = scmp.ne.s32.totalorder %s1340_s16, 0 }
  0x6f   : > { %v334_v9 = vrot.slane %v329_v8, %v1242_v7  ;;  %v410_v31 = vrot.slane %v329_v8, %v409_v29  ;;  %v415_v33 = vrot.slane %v329_v8, %v414_v30  ;;  %v430_v39 = vrot.slane %v425_v38, %v1242_v7  ;;  %s1007_s22 = smov [#allocation8]  }
  0x70   : > { %734 = vmatpush3.bf16.msra.mxu0 %v831_v2  ;;  %742 = vmatpush3.bf16.msra.mxu1 %v833_v23  ;;  %v516_v57 = vrot.slane %v425_v38, %v409_v29  ;;  %v521_v59 = vrot.slane %v425_v38, %v414_v30  ;;  %p930_p1 = pnand %p929_p11, %p1345_p0  ;;  %s932_s10 = sshll.u32 %s1007_s22, 4  ;;  %s933_s10 = int_to_ptr.vmem [resolvable:$false] %s932_s10 }
  0x71   : > { %751 = vmatprep.subr.bf16.mxu0 %v1005_v0  ;;  %743 = vmatprep.subr.bf16.mxu1 %v1005_v0  ;;  %s934_s18 = scalar_lea.vmem %s933_s10, 256  ;;  %p935_p7 = scmp.lt.s32.totalorder %s1282_s30, %s933_s10 }
  0x72   : > { %p931_p3 = pneg %p930_p1  ;;  %p936_p9 = scmp.lt.s32.totalorder %s934_s18, %s928_s14 }
  0x73   : > { %736 = vmatmul.mubr.msk.bf16.vlgmr.msra.gmra.mrb[0].mxu0 %vm347_vm1, %v330_v4 }
  0x74   : > { %755 = vmatprep.mubr.msk.bf16.mxu0 %vm1006_vm0, %v1005_v0  ;;  %744 = vmatpush3.bf16.msra.mxu1 %v834_v24  ;;  %p937_p12 = por %p936_p9, %p935_p7 }
  0x75   : > { %745 = vmatprep.subr.bf16.mxu1 %v1005_v0  ;;  %752 = vmatpush3.bf16.msra.mxu0 %v836_v52 }
  0x76   : > { %753 = vmatprep.subr.bf16.mxu0 %v1005_v0  ;;  %v527_v0 = vld [vmem:[%s1330_s6] sm:$0x7]  ;;  %p938_p2 = pnand %p937_p12, %p931_p3 }
  0x77   : > { %v532_v1 = vrot.slane %v527_v0, %v1242_v7 }
  0x78   : > { %746 = vmatpush3.bf16.msra.mxu1 %v835_v25 }
  0x79   : > { %754 = vmatpush3.bf16.msra.mxu0 %v837_v53 }
 0x146   : > { %v385_v10 = vpop.f32.mrb[0].mxu0 }
 0x147   : > { %v386_v11 = vadd.f32 %v385_v10, %v334_v9  ;;  %v737_v12 = vpop.f32.mrb[1].mxu0 }
 0x148   : > { %v388_v13 = vpop.f32.mrb[2].mxu0 }
 0x149   : > { %v391_v14 = vmax.f32 %v386_v11, 0.0  ;;  %v738_v15 = vpop.f32.mrb[3].mxu0 }
 0x14b   : > { %v393_v16 = vsel %vm392_vm2, %v391_v14, 0.0 }
 0x14c   : > { %394 = vadd.xlane.f32.xlu0 %v393_v16 }
 0x1d9   : > { %v395_v17 = vpop.xlane.xlu0 %394 }
 0x1da   : > { %v397_v18 = vmul.f32 0.015625, %v395_v17 }
 0x1dc   : > { %v398_v19 = vsub.f32 %v391_v14, %v397_v18 }
 0x1de   : > { %v399_v20 = vmul.f32 %v398_v19, %v398_v19 }
 0x1e0   : > { %v400_v21 = vsel %vm392_vm2, %v399_v20, 0.0 }
 0x1e1   : > { %401 = vadd.xlane.f32.xlu0 %v400_v21 }
 0x26e   : > { %v402_v26 = vpop.xlane.xlu0 %401 }
 0x26f   : > { %v403_v27 = vmul.f32 0.015625, %v402_v26 }
 0x271   : > { %v404_v28 = vadd.f32 1e-05, %v403_v27 }
 0x273   : > { %838 = vrsqrt.f32 %v404_v28 }
 0x27d   : > { %v839_v32 = vpop.eup %838 }
 0x27e   : > { %v406_v34 = vmul.f32 %v839_v32, %v398_v19 }
 0x280   : > { %v411_v35 = vmul.f32 %v410_v31, %v406_v34 }
 0x282   : > { %v416_v36 = vadd.f32 %v415_v33, %v411_v35 }
 0x284   : > { %v426_v37 = vpack.c.bf16 %v416_v36, %v416_v36 }
 0x286   : > { %748 = vmatmul.mubr.msk.bf16.vlgmr.msra.gmra.mrb[0].mxu1 %vm392_vm2, %v426_v37 }
 0x359   : > { %v492_v40 = vpop.f32.mrb[0].mxu1 }
 0x35a   : > { %v493_v41 = vadd.f32 %v492_v40, %v430_v39  ;;  %v749_v42 = vpop.f32.mrb[1].mxu1 }
 0x35b   : > { %v495_v43 = vpop.f32.mrb[2].mxu1 }
 0x35c   : > { %v498_v44 = vmax.f32 %v493_v41, 0.0  ;;  %v750_v45 = vpop.f32.mrb[3].mxu1 }
 0x35e   : > { %v499_v46 = vsel %vm347_vm1, %v498_v44, 0.0 }
 0x35f   : > { %500 = vadd.xlane.f32.xlu1 %v499_v46 }
 0x3ec   : > { %v501_v47 = vpop.xlane.xlu1 %500 }
 0x3ed   : > { %v503_v48 = vmul.f32 0.03125, %v501_v47 }
 0x3ef   : > { %v504_v49 = vsub.f32 %v498_v44, %v503_v48 }
 0x3f1   : > { %v505_v50 = vmul.f32 %v504_v49, %v504_v49 }
 0x3f3   : > { %v506_v51 = vsel %vm347_vm1, %v505_v50, 0.0 }
 0x3f4   : > { %507 = vadd.xlane.f32.xlu1 %v506_v51 }
 0x481   : > { %v508_v54 = vpop.xlane.xlu1 %507 }
 0x482   : > { %v509_v55 = vmul.f32 0.03125, %v508_v54 }
 0x484   : > { %v510_v56 = vadd.f32 1e-05, %v509_v55 }
 0x486   : > { %840 = vrsqrt.f32 %v510_v56 }
 0x490   : > { %v841_v58 = vpop.eup %840 }
 0x491   : > { %v512_v60 = vmul.f32 %v841_v58, %v504_v49 }
 0x493   : > { %v517_v61 = vmul.f32 %v516_v57, %v512_v60 }
 0x495   : > { %v522_v62 = vadd.f32 %v521_v59, %v517_v61 }
 0x497   : > { %v528_v63 = vpack.c.bf16 %v522_v62, %v522_v62 }
 0x499   : > { %756 = vmatmul.mubr.msk.bf16.vlgmr.msra.gmra.mrb[4].mxu0 %vm347_vm1, %v528_v63 }
 0x56c   : > { %v582_v2 = vpop.f32.mrb[4].mxu0 }
 0x56d   : > { %v583_v3 = vadd.f32 %v582_v2, %v532_v1  ;;  %v757_v4 = vpop.f32.mrb[5].mxu0 }
 0x56e   : > { %v585_v5 = vpop.f32.mrb[6].mxu0 }
 0x56f   : > { %v758_v6 = vpop.f32.mrb[7].mxu0  ;;  %589 = vst.msk [vmem:[%s322_s29] sm:$0xff] %vm588_vm3, %v583_v3 }
 0x570   : > { %941 = shalt.err (!%p938_p2)
}
 0x571   : > { %s942_s12 = scalar_lea.hbm %s1280_s11, 128  ;;  %s946_s19 = scalar_lea.hbm %s1331_s7, 256 }
 0x572   : > { %p943_p13 = scmp.ne.s32.totalorder %s1280_s11, %s942_s12  ;;  %p947_p4 = scmp.lt.u32.totalorder %s1280_s11, %s1331_s7 }
 0x573   : > { %p948_p5 = scmp.lt.u32.totalorder %s946_s19, %s942_s12  ;;  %p950_p11 = scmp.lt.u32.totalorder %s942_s12, %s1280_s11 }
 0x574   : > { %p944_p6 = pnand %p943_p13, %p1345_p0 }
 0x575   : > { %p949_p8 = por %p948_p5, %p947_p4 }
 0x576   : > { %p945_p10 = pneg %p944_p6 }
 0x577   : > { %p951_p1 = por %p950_p11, %p949_p8 }
 0x579   : > { %p952_p3 = pnand %p951_p1, %p945_p10 }
 0x57b   : > { %955 = shalt.err (!%p952_p3)
}
 0x57c   : > { %769 = dma.vmem_to_hbm [thread:$0]  (%p1345_p0), %s1282_s30, 128, %s1280_s11, %s591_s28  }
 0x57d PF: > { %s616_s9 = sand.u32 1, %s986_s24   ;;  %p1346_p7 = scmp.ne.s32.totalorder %s1336_s8, 0 }
 0x57e   : > { %p1347_p9 = scmp.ge.s32.totalorder %s998_s27, 2  ;;  %s617_s20 = scalar_lea.sflag [#allocation4], %s616_s9 }
 0x580   : > { %p783_p12 = pnand %p1347_p9, %p1346_p7 }
 0x582   : > { %981 = dma.done.wait (!%p783_p12), %s617_s20, 128  }
 0x583   : > { %983 = vsyncadd (!%p783_p12), %s617_s20, 4294967168  ;;  %p21_p2 = scmp.ge.s32.totalorder %s1158_s13, 4   ;;  %s1348_s24 = smov %s990_s25 }
 0x584   : > { %s1349_s25 = smov %s994_s26  ;;  %s1350_s26 = smov %s1174_s17 }
 0x585   : > { %s1351_s27 = smov %s1158_s13  ;;  %23 = sbr.rel (!%p21_p2) target bundleno = 6 (0x6), region = 101 }
 0x58c   :  { %622 = vsyncpa [#allocation3], 1 }
 0x58d   :  { %624 = vsyncpa [#allocation3 + $0x1], 1 }
 0x58e   :  { %625 = vsyncpa [#allocation6], 1 }
 0x58f   :  { %626 = vsyncpa [#allocation4], 1 }
 0x590   :  { %628 = vsyncpa [#allocation4 + $0x1], 1 }

</bundles_post_ra>
